<compile_context>
chip_gen: v5e
topology: v5e:2x2
jax: 0.10.0
libtpu: 0.0.40
codegen_flags: <defaults>
</compile_context>

<pallas_src>
import functools

import jax
import jax.numpy as jnp
import numpy as np
from jax.experimental import pallas as pl
from jax.experimental.pallas import tpu as pltpu

_LANE = 128


def _round_up(x, m):
    return (x + m - 1) // m * m


def _pick_nb(n, per_sample_bytes, max_block_bytes):
    """Largest divisor of n whose block fits the budget, keeping the grid >= 2
    steps when possible (so v7x's two TensorCores both get work)."""
    cap = max(1, max_block_bytes // max(per_sample_bytes, 1))
    if n >= 2:
        cap = min(cap, n // 2)
    nb = 1
    for d in range(1, n + 1):
        if n % d == 0 and d <= cap:
            nb = d
    return nb


# --------------------------- fused single-pass kernel -----------------------
def _ca_fused_kernel(x_ref, w1t_ref, b1_ref, w2t_ref, b2_ref, o_ref, *, inv_hw):
    # x_ref block: (NB, C, HW) in the input dtype; math in f32.
    xf = x_ref[...].astype(jnp.float32)                       # (NB, C, HW)
    avg = jnp.sum(xf, axis=-1) * inv_hw                       # (NB, C)
    h = jnp.maximum(
        jnp.dot(avg, w1t_ref[...], preferred_element_type=jnp.float32)
        + b1_ref[...], 0.0)                                    # (NB, mid)
    a = jax.nn.sigmoid(
        jnp.dot(h, w2t_ref[...], preferred_element_type=jnp.float32)
        + b2_ref[...])                                         # (NB, C)
    o_ref[...] = (xf * a[:, :, None]).astype(o_ref.dtype)


# --------------------------- tiled two-pass fallback ------------------------
def _ca_gate_kernel(x_ref, w1t_ref, b1_ref, w2t_ref, b2_ref, gate_ref, acc_ref,
                    *, inv_hw):
    t = pl.program_id(1)

    @pl.when(t == 0)
    def _():
        acc_ref[...] = jnp.zeros_like(acc_ref)

    # Partial spatial sum for this HW tile (pad region is zero-filled).
    acc_ref[...] += jnp.sum(x_ref[...].astype(jnp.float32), axis=-1)   # (1, C)

    @pl.when(t == pl.num_programs(1) - 1)
    def _():
        avg = acc_ref[...] * inv_hw                            # (1, C), true 1/HW
        h = jnp.maximum(
            jnp.dot(avg, w1t_ref[...], preferred_element_type=jnp.float32)
            + b1_ref[...], 0.0)
        a = jax.nn.sigmoid(
            jnp.dot(h, w2t_ref[...], preferred_element_type=jnp.float32)
            + b2_ref[...])                                     # (1, C)
        gate_ref[0] = a


def _ca_scale_kernel(gate_ref, x_ref, o_ref):
    a = gate_ref[0]                                            # (1, C) f32
    o_ref[...] = (x_ref[...].astype(jnp.float32) * a[:, :, None]).astype(o_ref.dtype)


# --------------------------------- wrapper ----------------------------------
def channel_attention(x_nchw, w1, b1, w2, b2, *, max_block_bytes=4 * 1024 * 1024):
    """y = x * sigmoid(W2 @ relu(W1 @ avg_hw(x) + b1) + b2).

    x_nchw: (N, C, H, W), any float dtype (kept end-to-end; math in f32).
    w1: (mid, C), b1: (mid,), w2: (C, mid), b2: (C,)  (1x1-conv weights squeezed).
    """
    N, C, H, W = x_nchw.shape
    mid = w1.shape[0]
    HW = H * W
    dtype = x_nchw.dtype
    itemsize = jnp.dtype(dtype).itemsize
    inv_hw = 1.0 / float(HW)

    x = x_nchw.reshape(N, C, HW)
    w1t = jnp.asarray(w1, jnp.float32).T    # (C, mid)
    w2t = jnp.asarray(w2, jnp.float32).T    # (mid, C)
    b1r = jnp.asarray(b1, jnp.float32).reshape(1, mid)
    b2r = jnp.asarray(b2, jnp.float32).reshape(1, C)

    per_sample = C * HW * itemsize

    if per_sample <= max_block_bytes:
        # ------- fused single pass: NB samples per grid step ----------------
        nb = _pick_nb(N, per_sample, max_block_bytes)
        block_bytes = nb * per_sample
        vmem_limit = int(min(48 << 20, max(16 << 20, 10 * block_bytes)))

        out = pl.pallas_call(
            functools.partial(_ca_fused_kernel, inv_hw=inv_hw),
            out_shape=jax.ShapeDtypeStruct((N, C, HW), dtype),
            grid_spec=pltpu.PrefetchScalarGridSpec(
                num_scalar_prefetch=0,
                grid=(N // nb,),
                in_specs=[
                    pl.BlockSpec((nb, C, HW), lambda n: (n, 0, 0)),   # x
                    pl.BlockSpec((C, mid), lambda n: (0, 0)),         # W1^T
                    pl.BlockSpec((1, mid), lambda n: (0, 0)),         # b1
                    pl.BlockSpec((mid, C), lambda n: (0, 0)),         # W2^T
                    pl.BlockSpec((1, C), lambda n: (0, 0)),           # b2
                ],
                out_specs=pl.BlockSpec((nb, C, HW), lambda n: (n, 0, 0)),
            ),
            compiler_params=pltpu.CompilerParams(
                dimension_semantics=("parallel",),
                vmem_limit_bytes=vmem_limit),
        )(x, w1t, b1r, w2t, b2r)
        return out.reshape(N, C, H, W)

    # ------- tiled two-pass fallback: one (C, HW) slice does not fit --------
    t_cap = max(_LANE, (max_block_bytes // max(C * itemsize, 1)) // _LANE * _LANE)
    T = min(t_cap, _round_up(HW, _LANE))
    HW_pad = _round_up(HW, T)
    x_p = x if HW_pad == HW else jnp.pad(x, ((0, 0), (0, 0), (0, HW_pad - HW)))
    n_t = HW_pad // T
    block_bytes = C * T * itemsize
    vmem_limit = int(min(48 << 20, max(16 << 20, 10 * block_bytes)))

    gate = pl.pallas_call(
        functools.partial(_ca_gate_kernel, inv_hw=inv_hw),
        out_shape=jax.ShapeDtypeStruct((N, 1, C), jnp.float32),
        grid_spec=pltpu.PrefetchScalarGridSpec(
            num_scalar_prefetch=0,
            grid=(N, n_t),
            in_specs=[
                pl.BlockSpec((1, C, T), lambda n, t: (n, 0, t)),      # x tile
                pl.BlockSpec((C, mid), lambda n, t: (0, 0)),
                pl.BlockSpec((1, mid), lambda n, t: (0, 0)),
                pl.BlockSpec((mid, C), lambda n, t: (0, 0)),
                pl.BlockSpec((1, C), lambda n, t: (0, 0)),
            ],
            out_specs=pl.BlockSpec((1, 1, C), lambda n, t: (n, 0, 0)),
            scratch_shapes=[pltpu.VMEM((1, C), jnp.float32)],
        ),
        compiler_params=pltpu.CompilerParams(
            dimension_semantics=("parallel", "arbitrary"),
            vmem_limit_bytes=vmem_limit),
    )(x_p, w1t, b1r, w2t, b2r)

    out = pl.pallas_call(
        _ca_scale_kernel,
        out_shape=jax.ShapeDtypeStruct((N, C, HW_pad), dtype),
        grid_spec=pltpu.PrefetchScalarGridSpec(
            num_scalar_prefetch=0,
            grid=(N, n_t),
            in_specs=[
                pl.BlockSpec((1, 1, C), lambda n, t: (n, 0, 0)),      # gate
                pl.BlockSpec((1, C, T), lambda n, t: (n, 0, t)),      # x tile
            ],
            out_specs=pl.BlockSpec((1, C, T), lambda n, t: (n, 0, t)),
        ),
        compiler_params=pltpu.CompilerParams(
            dimension_semantics=("parallel", "parallel"),
            vmem_limit_bytes=vmem_limit),
    )(gate, x_p)

    return out[:, :, :HW].reshape(N, C, H, W)


# --------------------------------- reference --------------------------------
def _reference(x, w1, b1, w2, b2):
    xf = jnp.asarray(x, jnp.float32)
    avg = jnp.mean(xf, axis=(2, 3))                            # (N, C)
    h = jnp.maximum(avg @ w1.T + b1, 0.0)                      # (N, mid)
    a = jax.nn.sigmoid(h @ w2.T + b2)                          # (N, C)
    return xf * a[:, :, None, None]


if __name__ == "__main__":
    key = jax.random.PRNGKey(0)

    def make_params(k, C, reduction=4):
        mid = max(2, C // reduction)
        k1, k2, k3, k4 = jax.random.split(k, 4)
        w1 = jax.random.normal(k1, (mid, C), dtype=jnp.float32) * 0.5
        b1 = jax.random.normal(k2, (mid,), dtype=jnp.float32) * 0.1
        w2 = jax.random.normal(k3, (C, mid), dtype=jnp.float32) * 0.5
        b2 = jax.random.normal(k4, (C,), dtype=jnp.float32) * 0.1
        return w1, b1, w2, b2

    # Test 1: StableHybridV3 config (hidden_channels=14, reduction=4 -> mid=3),
    #         f32, fused single-pass path.
    k0, kx = jax.random.split(key)
    N, C, H, W = 2, 14, 16, 16
    w1, b1, w2, b2 = make_params(k0, C)
    x = jax.random.normal(kx, (N, C, H, W), dtype=jnp.float32)
    y = jax.block_until_ready(channel_attention(x, w1, b1, w2, b2))
    np.testing.assert_allclose(np.asarray(y), np.asarray(_reference(x, w1, b1, w2, b2)),
                               rtol=1e-5, atol=1e-5)

    # Test 2: bf16 end-to-end, NB=4 batching (grid length 2 -> both v7x cores).
    k0, kx = jax.random.split(k0)
    N, C, H, W = 8, 16, 32, 32
    w1, b1, w2, b2 = make_params(k0, C)
    x = jax.random.normal(kx, (N, C, H, W), dtype=jnp.float32).astype(jnp.bfloat16)
    y = jax.block_until_ready(channel_attention(x, w1, b1, w2, b2))
    assert y.dtype == jnp.bfloat16
    np.testing.assert_allclose(np.asarray(jnp.asarray(y, jnp.float32)),
                               np.asarray(_reference(x, w1, b1, w2, b2)),
                               rtol=2e-2, atol=2e-2)

    # Test 3: tiled two-pass fallback with non-128-multiple spatial size
    #         (forced via an artificially tiny block budget).
    k0, kx = jax.random.split(k0)
    N, C, H, W = 2, 8, 20, 20
    w1, b1, w2, b2 = make_params(k0, C)
    x = jax.random.normal(kx, (N, C, H, W), dtype=jnp.float32)
    y = jax.block_until_ready(
        channel_attention(x, w1, b1, w2, b2, max_block_bytes=4096))
    np.testing.assert_allclose(np.asarray(y), np.asarray(_reference(x, w1, b1, w2, b2)),
                               rtol=1e-5, atol=1e-5)

    print("KERNEL_OK")
</pallas_src>

<mosaic_0001>
module attributes {stable_mosaic.version = 11 : i64} {
  func.func @_ca_fused_kernel(%arg0: i32, %arg1: memref<1x14x256xf32, #tpu.memory_space<vmem>>, %arg2: memref<14x3xf32, #tpu.memory_space<vmem>>, %arg3: memref<1x3xf32, #tpu.memory_space<vmem>>, %arg4: memref<3x14xf32, #tpu.memory_space<vmem>>, %arg5: memref<1x14xf32, #tpu.memory_space<vmem>>, %arg6: memref<1x14x256xf32, #tpu.memory_space<vmem>>) attributes {dimension_semantics = [#tpu.dimension_semantics<parallel>], iteration_bounds = array<i64: 2>, scalar_prefetch = 0 : i64, scratch_operands = 0 : i64, tpu.core_type = #tpu.core_type<tc>, window_params = [{transform_indices = @transform_0, window_bounds = array<i64: 1, 14, 256>}, {pipeline_mode = #tpu.pipeline_mode<synchronous>, transform_indices = @transform_1, window_bounds = array<i64: 14, 3>}, {pipeline_mode = #tpu.pipeline_mode<synchronous>, transform_indices = @transform_2, window_bounds = array<i64: 1, 3>}, {pipeline_mode = #tpu.pipeline_mode<synchronous>, transform_indices = @transform_3, window_bounds = array<i64: 3, 14>}, {pipeline_mode = #tpu.pipeline_mode<synchronous>, transform_indices = @transform_4, window_bounds = array<i64: 1, 14>}, {transform_indices = @transform_5, window_bounds = array<i64: 1, 14, 256>}]} {
    %c0 = arith.constant 0 : index
    %c0_0 = arith.constant 0 : index
    %c0_1 = arith.constant 0 : index
    %0 = vector.load %arg1[%c0, %c0_0, %c0_1] : memref<1x14x256xf32, #tpu.memory_space<vmem>>, vector<1x14x256xf32>
    %cst = arith.constant dense<0.000000e+00> : vector<1x14xf32>
    %1 = vector.multi_reduction <add>, %0, %cst [2] : vector<1x14x256xf32> to vector<1x14xf32>
    %cst_2 = arith.constant 3.906250e-03 : f32
    %2 = vector.broadcast %cst_2 : f32 to vector<1x14xf32>
    %3 = arith.mulf %1, %2 : vector<1x14xf32>
    %c0_3 = arith.constant 0 : index
    %c0_4 = arith.constant 0 : index
    %4 = vector.load %arg2[%c0_3, %c0_4] : memref<14x3xf32, #tpu.memory_space<vmem>>, vector<14x3xf32>
    %cst_5 = arith.constant dense<0.000000e+00> : vector<1x3xf32>
    %5 = tpu.matmul %3, %4, %cst_5 {dimension_numbers = #tpu.dot_dimension_numbers<[1], [0], [0], [1], [0, 0, 1, 1], [], []>} : vector<1x14xf32>, vector<14x3xf32>, vector<1x3xf32> -> vector<1x3xf32>
    %c0_6 = arith.constant 0 : index
    %c0_7 = arith.constant 0 : index
    %6 = vector.load %arg3[%c0_6, %c0_7] : memref<1x3xf32, #tpu.memory_space<vmem>>, vector<1x3xf32>
    %7 = arith.addf %5, %6 : vector<1x3xf32>
    %cst_8 = arith.constant 0.000000e+00 : f32
    %8 = vector.broadcast %cst_8 : f32 to vector<1x3xf32>
    %9 = arith.maximumf %7, %8 : vector<1x3xf32>
    %c0_9 = arith.constant 0 : index
    %c0_10 = arith.constant 0 : index
    %10 = vector.load %arg4[%c0_9, %c0_10] : memref<3x14xf32, #tpu.memory_space<vmem>>, vector<3x14xf32>
    %cst_11 = arith.constant dense<0.000000e+00> : vector<1x14xf32>
    %11 = tpu.matmul %9, %10, %cst_11 {dimension_numbers = #tpu.dot_dimension_numbers<[1], [0], [0], [1], [0, 0, 1, 1], [], []>} : vector<1x3xf32>, vector<3x14xf32>, vector<1x14xf32> -> vector<1x14xf32>
    %c0_12 = arith.constant 0 : index
    %c0_13 = arith.constant 0 : index
    %12 = vector.load %arg5[%c0_12, %c0_13] : memref<1x14xf32, #tpu.memory_space<vmem>>, vector<1x14xf32>
    %13 = arith.addf %11, %12 : vector<1x14xf32>
    %14 = arith.negf %13 : vector<1x14xf32>
    %15 = math.exp %14 : vector<1x14xf32>
    %cst_14 = arith.constant 1.000000e+00 : f32
    %16 = vector.broadcast %cst_14 : f32 to vector<1x14xf32>
    %17 = arith.addf %16, %15 : vector<1x14xf32>
    %18 = arith.divf %16, %17 : vector<1x14xf32>
    %19 = vector.shape_cast %18 : vector<1x14xf32> to vector<1x14x1xf32>
    %20 = vector.broadcast %19 : vector<1x14x1xf32> to vector<1x14x256xf32>
    %21 = arith.mulf %0, %20 : vector<1x14x256xf32>
    %c0_15 = arith.constant 0 : index
    %c0_16 = arith.constant 0 : index
    %c0_17 = arith.constant 0 : index
    %22 = vector.load %arg6[%c0_15, %c0_16, %c0_17] : memref<1x14x256xf32, #tpu.memory_space<vmem>>, vector<1x14x256xf32>
    tpu.vector_store %arg6[%c0_15, %c0_16, %c0_17], %21 {strides = array<i32>} : memref<1x14x256xf32, #tpu.memory_space<vmem>>, vector<1x14x256xf32>,
    return
  }
  func.func @transform_0(%arg0: i32) -> (i32, i32, i32) {
    %c0_i32 = arith.constant 0 : i32
    %c0_i32_0 = arith.constant 0 : i32
    %c0_i32_1 = arith.constant 0 : i32
    return %arg0, %c0_i32, %c0_i32_0 : i32, i32, i32
  }
  func.func @transform_1(%arg0: i32) -> (i32, i32) {
    %c0_i32 = arith.constant 0 : i32
    %c0_i32_0 = arith.constant 0 : i32
    %c0_i32_1 = arith.constant 0 : i32
    return %c0_i32, %c0_i32_0 : i32, i32
  }
  func.func @transform_2(%arg0: i32) -> (i32, i32) {
    %c0_i32 = arith.constant 0 : i32
    %c0_i32_0 = arith.constant 0 : i32
    %c0_i32_1 = arith.constant 0 : i32
    return %c0_i32, %c0_i32_0 : i32, i32
  }
  func.func @transform_3(%arg0: i32) -> (i32, i32) {
    %c0_i32 = arith.constant 0 : i32
    %c0_i32_0 = arith.constant 0 : i32
    %c0_i32_1 = arith.constant 0 : i32
    return %c0_i32, %c0_i32_0 : i32, i32
  }
  func.func @transform_4(%arg0: i32) -> (i32, i32) {
    %c0_i32 = arith.constant 0 : i32
    %c0_i32_0 = arith.constant 0 : i32
    %c0_i32_1 = arith.constant 0 : i32
    return %c0_i32, %c0_i32_0 : i32, i32
  }
  func.func @transform_5(%arg0: i32) -> (i32, i32, i32) {
    %c0_i32 = arith.constant 0 : i32
    %c0_i32_0 = arith.constant 0 : i32
    %c0_i32_1 = arith.constant 0 : i32
    return %arg0, %c0_i32, %c0_i32_0 : i32, i32, i32
  }
}

</mosaic_0001>

<bundles_post_ra>
// kernel: tpu_custom_call.1
= control target key start
LH: loop header
LB: loop body
LE: loop exit
PB: predicated region body
PF: predicated region fallthrough
CT: control target
= control target key end

     0   :  { %s475_s18 = smov 0   ;;  %s530_s0 = inlined_call_operand.vmem [shape: f32[2,14,256], index: 0, kind: input, shape index: {}]   ;;  %s531_s1 = inlined_call_operand.vmem [shape: f32[14,3], index: 1, kind: input, shape index: {}]   ;;  %s532_s2 = inlined_call_operand.vmem [shape: f32[1,3], index: 2, kind: input, shape index: {}]   ;;  %s533_s3 = inlined_call_operand.vmem [shape: f32[3,14], index: 3, kind: input, shape index: {}]   ;;  %s534_s4 = inlined_call_operand.vmem [shape: f32[1,14], index: 4, kind: input, shape index: {}]   ;;  %s535_s5 = inlined_call_operand.vmem [shape: f32[2,14,256], index: 5, kind: output, shape index: {}]  }
   0x1 LB: > { %s404_s19 = sadd.s32 4294967295, %s443_s18   ;;  %p408_p0 = scmp.ge.s32.totalorder %s443_s18, 1  ;;  %s443_s18 = sphi %s475_s18, %s15_s18  }
   0x2   : > { %p187_p1 = scmp.lt.s32.totalorder %s443_s18, 3 }
   0x4   : > { %p188_p2 = pnand %p408_p0, %p187_p1 }
   0x5   : > { %p215_p3 = scmp.lt.s32.totalorder (!%p188_p2), %s404_s19, 1 }
   0x6   : > { %191 = sbr.rel (%p188_p2) target bundleno = 569 (0x239), region = 40 }
   0xb   : > { %s537_s19 = smov (!%p215_p3, %s404_s19), 1  ;;  %vm232_vm0 = vcmask 1045504   ;;  %v241_v8 = vld [vmem:[%s531_s1 + $0x8] sm:$0x3f]  ;;  %v240_v9 = vld [vmem:[%s531_s1] sm:$0xff]  ;;  %v245_v11 = vlaneseq  ;;  %vm250_vm1 = vcmask 130112  }
   0xc   : > { %s420_s20 = sshll.u32 %s537_s19, 5  ;;  %413 = vmatpush.msk.msra.mxu0 %vm232_vm0, %v241_v8  ;;  %vm252_vm2 = vcmask 113664   ;;  %v279_v20 = vld [vmem:[%s533_s3] sm:$0x7]  ;;  %vm285_vm3 = vcmask 1042432   ;;  %vm281_vm4 = vcmask 23552  }
   0xd   : > { %s219_s23 = scalar_lea.vmem %s530_s0, %s420_s20  ;;  %v246_v12 = vand.u32 127, %v245_v11  ;;  %415 = vmatpush.msk.msra.mxu1 %vm285_vm3, %v279_v20  ;;  %v242_v21 = vld [vmem:[%s532_s2] sm:$0x1]  ;;  %v330_v25 = vshrl.u32 %v245_v11, 7  ;;  %s224_s11 = scalar_lea.vmem %s535_s5, %s420_s20 }
   0xe   : > { %v491_v0 = vld [vmem:[%s219_s23] sm:$0xff]  ;;  %v493_v1 = vld [vmem:[%s219_s23 + $0x8] sm:$0xff]  ;;  %v497_v3 = vld [vmem:[%s219_s23 + $0x10] sm:$0x3f]  ;;  %273 = vmatpush.msra.mxu0 %v240_v9 }
   0xf   : > { %v229_v2 = vadd.f32 %v493_v1, %v491_v0  ;;  %v499_v4 = vld [vmem:[%s219_s23 + $0x18] sm:$0x3f]  ;;  %v233_v5 = vsel %vm232_vm0, %v497_v3, 0.0  ;;  %v248_v14 = vadd.s32 4294967288, %v246_v12  ;;  %430 = vset.pattern.permute.xlu1 %v330_v25  ;;  %v337_v26 = vadd.s32 8, %v330_v25 }
  0x10   : > { %v234_v6 = vsel %vm232_vm0, %v499_v4, 0.0  ;;  %v280_v27 = vld [vmem:[%s534_s4] sm:$0x1] }
  0x11   : > { %230 = vadd.xlane.f32.xlu0 %v229_v2  ;;  %v235_v7 = vadd.f32 %v234_v6, %v233_v5 }
  0x12   : > { %432 = vset.pattern.permute.xlu0 %v337_v26 }
  0x19   : > { %236 = vadd.xlane.f32.xlu0 %v235_v7 }
  0x84   : > { %v231_v10 = vpop.xlane.xlu0 %230 }
  0x85   : > { %v238_v13 = vmul.f32 0.00390625, %v231_v10 }
  0x87   : > { %v247_v17 = vperm.slane %v238_v13, %v246_v12 }
  0x8c   : > { %v237_v15 = vpop.xlane.xlu0 %236 }
  0x8d   : > { %v239_v16 = vmul.f32 0.00390625, %v237_v15 }
  0x8f   : > { %v249_v18 = vperm.slane %v239_v16, %v248_v14 }
  0x91   : > { %v251_v19 = vsel %vm250_vm1, %v249_v18, %v247_v17 }
  0x92   : > { %414 = vmatmul.msk.f32.vlgmr.msra.gmra.mxu0 %vm252_vm2, %v251_v19 }
 0x10f   : > { %v275_v22 = vpop.f32.mrf.mxu0 }
 0x110   : > { %v276_v23 = vadd.f32 %v275_v22, %v242_v21 }
 0x112   : > { %v278_v24 = vmax.f32 %v276_v23, 0.0 }
 0x114   : > { %416 = vmatmul.msk.f32.vlgmr.msra.gmra.mxu1 %vm281_vm4, %v278_v24 }
 0x191   : > { %v306_v28 = vpop.f32.mrf.mxu1 }
 0x192   : > { %v307_v29 = vadd.f32 %v306_v28, %v280_v27 }
 0x194   : > { %v417_v30 = vmul.f32 -1.442695, %v307_v29 }
 0x196   : > { %433 = vpow2.f32 %v417_v30 }
 0x19c   : > { %v434_v31 = vpop.eup %433 }
 0x19d   : > { %v312_v32 = vadd.f32 1.0, %v434_v31 }
 0x19f   : > { %435 = vrcp.f32 %v312_v32  ;;  %v324_v36 = vand.u32 2147483648, %v312_v32  ;;  %v322_v38 = vand.u32 2147483647, %v312_v32  ;;  %vm318_vm6 = vweird.f32 %v312_v32 }
 0x1a1   : > { %v325_v40 = vor.u32 1.1754944e-38, %v324_v36  ;;  %vm323_vm8 = vcmp.eq.f32.partialorder %v322_v38, 8.507059e+37 }
 0x1a5   : > { %v436_v33 = vpop.eup %435 }
 0x1a6   : > { %v314_v34 = vmul.f32 %v436_v33, %v312_v32  ;;  %vm319_vm5 = vweird.f32 %v436_v33 }
 0x1a7   : > { %vm320_vm7 = vmor %vm318_vm6, %vm319_vm5 }
 0x1a8   : > { %v315_v35 = vsub.f32 1.0, %v314_v34 }
 0x1aa   : > { %v316_v37 = vmul.f32 %v436_v33, %v315_v35 }
 0x1ac   : > { %v317_v39 = vadd.f32 %v436_v33, %v316_v37 }
 0x1ae   : > { %v321_v41 = vsel %vm320_vm7, %v436_v33, %v317_v39 }
 0x1af   : > { %v326_v42 = vsel %vm323_vm8, %v325_v40, %v321_v41 }
 0x1b0   : > { %v328_v43 = vperm.slane %v326_v42, 0 }
 0x1b2   : > { %333 = vperm.xlu1 %430, %v328_v43  }
 0x1ba   : > { %431 = vset.pattern.permute.xlu1 %v337_v26 }
 0x1c2   : > { %339 = vperm.xlu1 %431, %v328_v43  }
 0x224   : > { %v334_v44 = vpop.permute.xlu1 %333 }
 0x225   : > { %v341_v45 = vmul.f32 %v334_v44, %v491_v0  ;;  %v342_v46 = vmul.f32 %v334_v44, %v493_v1 }
 0x227   : > { %345 = vst [vmem:[%s224_s11] sm:$0xff] %v341_v45 }
 0x228   : > { %346 = vst [vmem:[%s224_s11 + $0x8] sm:$0xff] %v342_v46 }
 0x234   : > { %v340_v47 = vpop.permute.xlu1 %339 }
 0x235   : > { %v343_v48 = vmul.f32 %v340_v47, %v497_v3  ;;  %v344_v49 = vmul.f32 %v340_v47, %v499_v4 }
 0x237   : > { %347 = vst [vmem:[%s224_s11 + $0x10] sm:$0x3f] %v343_v48 }
 0x238   : > { %348 = vst [vmem:[%s224_s11 + $0x18] sm:$0x3f] %v344_v49 }
 0x239 PF: > { %s15_s18 = sadd.s32 1, %s443_s18  }
 0x23a   : > { %p12_p4 = scmp.ge.s32.totalorder %s15_s18, 4  }
 0x23c   :  { %14 = sbr.rel (!%p12_p4) target bundleno = 1 (0x1), region = 70 }

</bundles_post_ra>
